<compile_context>
chip_gen: v7x
topology: tpu7x:2x2x1
jax: 0.10.0
libtpu: 0.0.40
codegen_flags: <defaults>
</compile_context>

<pallas_src>
import functools

import jax
import jax.numpy as jnp
from jax.experimental import pallas as pl
from jax.experimental.pallas import tpu as pltpu


def _conv3x3_prelu_kernel(x_ref, w_ref, b_ref, a_ref, o_ref, *, H, W, Cout):
    # x_ref: (1, H+2, (W+2)*Cin)   lane-dense zero-padded input, lane = (w, cin) row-major
    # w_ref: (3, (W+2)*Cin, W*Cout) banded conv weights, one band per dy tap row
    # b_ref: (1, W*Cout)            bias tiled across W (lane-dense)
    # a_ref: (1,) in SMEM           PReLU alpha (single shared scalar)
    # o_ref: (1, H, W*Cout)         conv + bias + PReLU output, lane-dense
    acc = jnp.dot(x_ref[0, 0:H, :], w_ref[0], preferred_element_type=jnp.float32)
    for dy in range(1, 3):
        acc = acc + jnp.dot(x_ref[0, dy:dy + H, :], w_ref[dy],
                            preferred_element_type=jnp.float32)
    acc = acc + b_ref[...]                       # (1, W*Cout) broadcasts over H rows
    alpha = a_ref[0]                             # scalar from SMEM
    out = jnp.where(acc >= 0, acc, alpha * acc)  # PReLU (scalar alpha)
    o_ref[0] = out.astype(o_ref.dtype)


def _build_banded_weights(w_oihw, W):
    """Fold the 3 dx taps into a banded ((W+2)*Cin, W*Cout) weight, one per dy.

    band[dy][(w+dx)*Cin + cin, w*Cout + cout] = w_hwio[dy, dx, cin, cout]
    so that  x_pad_row(h+dy) @ band[dy]  summed over dy gives the full 3x3 conv
    output row h in lane-dense (w, cout) order.
    """
    w_hwio = jnp.transpose(w_oihw, (2, 3, 1, 0))        # (3, 3, Cin, Cout)
    _, _, Cin, Cout = w_hwio.shape
    eye = jnp.eye(W, dtype=w_hwio.dtype)
    bands = []
    for dy in range(3):
        band = jnp.zeros(((W + 2) * Cin, W * Cout), w_hwio.dtype)
        for dx in range(3):
            blk = jnp.kron(eye, w_hwio[dy, dx])          # (W*Cin, W*Cout) block diag
            band = band + jnp.pad(blk, ((dx * Cin, (2 - dx) * Cin), (0, 0)))
        bands.append(band)
    return jnp.stack(bands)                              # (3, (W+2)*Cin, W*Cout)


def pixshuffle_block(x_nchw, w_oihw, bias, alpha, upscale_factor=2):
    """Forward pass matching PyTorch PixShuffleBlock. Input/output are NCHW."""
    N, Cin, H, W = x_nchw.shape
    Cout = w_oihw.shape[0]
    r = upscale_factor
    C = Cout // (r * r)
    assert C * r * r == Cout

    # NCHW -> NHWC, zero-pad spatially, collapse (W+2, Cin) into a lane-dense last dim.
    x = jnp.transpose(x_nchw, (0, 2, 3, 1))
    x_pad = jnp.pad(x, ((0, 0), (1, 1), (1, 1), (0, 0)))
    x_flat = x_pad.reshape(N, H + 2, (W + 2) * Cin)

    w_band = _build_banded_weights(w_oihw, W)                       # (3, (W+2)*Cin, W*Cout)
    b_tiled = jnp.tile(bias.astype(jnp.float32), W).reshape(1, W * Cout)
    a1 = jnp.asarray(alpha, jnp.float32).reshape(1)

    kernel = functools.partial(_conv3x3_prelu_kernel, H=H, W=W, Cout=Cout)

    y = pl.pallas_call(
        kernel,
        out_shape=jax.ShapeDtypeStruct((N, H, W * Cout), x.dtype),
        grid=(N,),
        in_specs=[
            pl.BlockSpec((1, H + 2, (W + 2) * Cin), lambda n: (n, 0, 0)),
            pl.BlockSpec((3, (W + 2) * Cin, W * Cout), lambda n: (0, 0, 0)),
            pl.BlockSpec((1, W * Cout), lambda n: (0, 0)),
            pl.BlockSpec(memory_space=pltpu.MemorySpace.SMEM),       # alpha scalar
        ],
        out_specs=pl.BlockSpec((1, H, W * Cout), lambda n: (n, 0, 0)),
        compiler_params=pltpu.CompilerParams(
            dimension_semantics=("parallel",)),
    )(x_flat, w_band, b_tiled, a1)

    # Lane-dense (N, H, W*Cout) -> (N, H, W, C, r, r); PixelShuffle: channel
    # c*r*r + i*r + j maps to spatial offset (i, j) — matches torch.nn.PixelShuffle.
    y = y.reshape(N, H, W, C, r, r)
    y = jnp.transpose(y, (0, 1, 4, 2, 5, 3)).reshape(N, H * r, W * r, C)
    return jnp.transpose(y, (0, 3, 1, 2))                            # back to NCHW


def _reference(x_nchw, w_oihw, bias, alpha, upscale_factor=2):
    """Pure-JAX reference (lax conv) for correctness checking."""
    N, Cin, H, W = x_nchw.shape
    Cout = w_oihw.shape[0]
    r = upscale_factor
    C = Cout // (r * r)
    x = jnp.transpose(x_nchw, (0, 2, 3, 1))
    w_hwio = jnp.transpose(w_oihw, (2, 3, 1, 0))
    y = jax.lax.conv_general_dilated(
        x, w_hwio, window_strides=(1, 1), padding="SAME",
        dimension_numbers=("NHWC", "HWIO", "NHWC")) + bias[None, None, None, :]
    y = jnp.where(y >= 0, y, alpha * y)
    y = y.reshape(N, H, W, C, r, r)
    y = jnp.transpose(y, (0, 1, 4, 2, 5, 3)).reshape(N, H * r, W * r, C)
    return jnp.transpose(y, (0, 3, 1, 2))


if __name__ == "__main__":
    # Small shapes consistent with the module: N=2, in_features=4, 16x16, r=2.
    N, Cin, H, W = 2, 4, 16, 16
    r = 2
    Cout = Cin * r * r

    key = jax.random.PRNGKey(0)
    kx, kw, kb = jax.random.split(key, 3)
    x = jax.random.normal(kx, (N, Cin, H, W), dtype=jnp.float32)

    # Deterministic parameter init (Conv2d-like uniform scale), PyTorch shapes.
    fan_in = Cin * 3 * 3
    bound = 1.0 / (fan_in ** 0.5)
    w = jax.random.uniform(kw, (Cout, Cin, 3, 3), jnp.float32, -bound, bound)
    b = jax.random.uniform(kb, (Cout,), jnp.float32, -bound, bound)
    alpha = jnp.float32(0.25)  # nn.PReLU() default init, single shared parameter

    out = pixshuffle_block(x, w, b, alpha, upscale_factor=r)
    out = jax.block_until_ready(out)

    ref = _reference(x, w, b, alpha, upscale_factor=r)
    assert out.shape == (N, Cin, H * r, W * r), out.shape
    assert jnp.allclose(out, ref, atol=1e-5, rtol=1e-5), float(
        jnp.max(jnp.abs(out - ref)))

    print("KERNEL_OK")
</pallas_src>

<mosaic_0001>
module attributes {stable_mosaic.version = 11 : i64} {
  func.func @_conv3x3_prelu_kernel(%arg0: i32, %arg1: memref<1x18x72xf32, #tpu.memory_space<vmem>>, %arg2: memref<3x72x256xf32, #tpu.memory_space<vmem>>, %arg3: memref<1x256xf32, #tpu.memory_space<vmem>>, %arg4: memref<1xf32, #tpu.memory_space<smem>>, %arg5: memref<1x16x256xf32, #tpu.memory_space<vmem>>) attributes {dimension_semantics = [#tpu.dimension_semantics<parallel>], iteration_bounds = array<i64: 2>, scalar_prefetch = 0 : i64, scratch_operands = 0 : i64, tpu.core_type = #tpu.core_type<tc>, window_params = [{transform_indices = @transform_0, window_bounds = array<i64: 1, 18, 72>}, {pipeline_mode = #tpu.pipeline_mode<synchronous>, transform_indices = @transform_1, window_bounds = array<i64: 3, 72, 256>}, {pipeline_mode = #tpu.pipeline_mode<synchronous>, transform_indices = @transform_2, window_bounds = array<i64: 1, 256>}, {transform_indices = @transform_3, window_bounds = array<i64: 1>}, {transform_indices = @transform_4, window_bounds = array<i64: 1, 16, 256>}]} {
    %c0 = arith.constant 0 : index
    %c0_0 = arith.constant 0 : index
    %c0_1 = arith.constant 0 : index
    %0 = vector.load %arg1[%c0, %c0_0, %c0_1] : memref<1x18x72xf32, #tpu.memory_space<vmem>>, vector<1x16x72xf32>
    %1 = vector.shape_cast %0 : vector<1x16x72xf32> to vector<16x72xf32>
    %c0_2 = arith.constant 0 : index
    %c0_3 = arith.constant 0 : index
    %c0_4 = arith.constant 0 : index
    %2 = vector.load %arg2[%c0_2, %c0_3, %c0_4] : memref<3x72x256xf32, #tpu.memory_space<vmem>>, vector<1x72x256xf32>
    %3 = vector.shape_cast %2 : vector<1x72x256xf32> to vector<72x256xf32>
    %cst = arith.constant dense<0.000000e+00> : vector<16x256xf32>
    %4 = tpu.matmul %1, %3, %cst {dimension_numbers = #tpu.dot_dimension_numbers<[1], [0], [0], [1], [0, 0, 1, 1], [], []>} : vector<16x72xf32>, vector<72x256xf32>, vector<16x256xf32> -> vector<16x256xf32>
    %c0_5 = arith.constant 0 : index
    %c1 = arith.constant 1 : index
    %c0_6 = arith.constant 0 : index
    %5 = vector.load %arg1[%c0_5, %c1, %c0_6] : memref<1x18x72xf32, #tpu.memory_space<vmem>>, vector<1x16x72xf32>
    %6 = vector.shape_cast %5 : vector<1x16x72xf32> to vector<16x72xf32>
    %c1_7 = arith.constant 1 : index
    %c0_8 = arith.constant 0 : index
    %c0_9 = arith.constant 0 : index
    %7 = vector.load %arg2[%c1_7, %c0_8, %c0_9] : memref<3x72x256xf32, #tpu.memory_space<vmem>>, vector<1x72x256xf32>
    %8 = vector.shape_cast %7 : vector<1x72x256xf32> to vector<72x256xf32>
    %cst_10 = arith.constant dense<0.000000e+00> : vector<16x256xf32>
    %9 = tpu.matmul %6, %8, %cst_10 {dimension_numbers = #tpu.dot_dimension_numbers<[1], [0], [0], [1], [0, 0, 1, 1], [], []>} : vector<16x72xf32>, vector<72x256xf32>, vector<16x256xf32> -> vector<16x256xf32>
    %10 = arith.addf %4, %9 : vector<16x256xf32>
    %c0_11 = arith.constant 0 : index
    %c2 = arith.constant 2 : index
    %c0_12 = arith.constant 0 : index
    %11 = vector.load %arg1[%c0_11, %c2, %c0_12] : memref<1x18x72xf32, #tpu.memory_space<vmem>>, vector<1x16x72xf32>
    %12 = vector.shape_cast %11 : vector<1x16x72xf32> to vector<16x72xf32>
    %c2_13 = arith.constant 2 : index
    %c0_14 = arith.constant 0 : index
    %c0_15 = arith.constant 0 : index
    %13 = vector.load %arg2[%c2_13, %c0_14, %c0_15] : memref<3x72x256xf32, #tpu.memory_space<vmem>>, vector<1x72x256xf32>
    %14 = vector.shape_cast %13 : vector<1x72x256xf32> to vector<72x256xf32>
    %cst_16 = arith.constant dense<0.000000e+00> : vector<16x256xf32>
    %15 = tpu.matmul %12, %14, %cst_16 {dimension_numbers = #tpu.dot_dimension_numbers<[1], [0], [0], [1], [0, 0, 1, 1], [], []>} : vector<16x72xf32>, vector<72x256xf32>, vector<16x256xf32> -> vector<16x256xf32>
    %16 = arith.addf %10, %15 : vector<16x256xf32>
    %c0_17 = arith.constant 0 : index
    %c0_18 = arith.constant 0 : index
    %17 = vector.load %arg3[%c0_17, %c0_18] : memref<1x256xf32, #tpu.memory_space<vmem>>, vector<1x256xf32>
    %18 = vector.broadcast %17 : vector<1x256xf32> to vector<16x256xf32>
    %19 = arith.addf %16, %18 : vector<16x256xf32>
    %c0_19 = arith.constant 0 : index
    %20 = memref.load %arg4[%c0_19] : memref<1xf32, #tpu.memory_space<smem>>
    %cst_20 = arith.constant 0.000000e+00 : f32
    %21 = vector.broadcast %cst_20 : f32 to vector<16x256xf32>
    %22 = arith.cmpf oge, %19, %21 : vector<16x256xf32>
    %23 = vector.broadcast %20 : f32 to vector<16x256xf32>
    %24 = arith.mulf %23, %19 : vector<16x256xf32>
    %25 = arith.select %22, %19, %24 : vector<16x256xi1>, vector<16x256xf32>
    %c0_21 = arith.constant 0 : index
    %c0_22 = arith.constant 0 : index
    %c0_23 = arith.constant 0 : index
    %26 = vector.load %arg5[%c0_21, %c0_22, %c0_23] : memref<1x16x256xf32, #tpu.memory_space<vmem>>, vector<1x16x256xf32>
    %27 = vector.shape_cast %26 : vector<1x16x256xf32> to vector<16x256xf32>
    %28 = vector.shape_cast %25 : vector<16x256xf32> to vector<1x16x256xf32>
    tpu.vector_store %arg5[%c0_21, %c0_22, %c0_23], %28 {strides = array<i32>} : memref<1x16x256xf32, #tpu.memory_space<vmem>>, vector<1x16x256xf32>,
    return
  }
  func.func @transform_0(%arg0: i32) -> (i32, i32, i32) {
    %c0_i32 = arith.constant 0 : i32
    %c0_i32_0 = arith.constant 0 : i32
    %c0_i32_1 = arith.constant 0 : i32
    return %arg0, %c0_i32, %c0_i32_0 : i32, i32, i32
  }
  func.func @transform_1(%arg0: i32) -> (i32, i32, i32) {
    %c0_i32 = arith.constant 0 : i32
    %c0_i32_0 = arith.constant 0 : i32
    %c0_i32_1 = arith.constant 0 : i32
    %c0_i32_2 = arith.constant 0 : i32
    return %c0_i32, %c0_i32_0, %c0_i32_1 : i32, i32, i32
  }
  func.func @transform_2(%arg0: i32) -> (i32, i32) {
    %c0_i32 = arith.constant 0 : i32
    %c0_i32_0 = arith.constant 0 : i32
    %c0_i32_1 = arith.constant 0 : i32
    return %c0_i32, %c0_i32_0 : i32, i32
  }
  func.func @transform_3(%arg0: i32) -> i32 {
    %c0_i32 = arith.constant 0 : i32
    %c0_i32_0 = arith.constant 0 : i32
    return %c0_i32 : i32
  }
  func.func @transform_4(%arg0: i32) -> (i32, i32, i32) {
    %c0_i32 = arith.constant 0 : i32
    %c0_i32_0 = arith.constant 0 : i32
    %c0_i32_1 = arith.constant 0 : i32
    return %arg0, %c0_i32, %c0_i32_0 : i32, i32, i32
  }
}

</mosaic_0001>

<bundles_post_ra>
// kernel: tpu_custom_call.1
= control target key start
LH: loop header
LB: loop body
LE: loop exit
PB: predicated region body
PF: predicated region fallthrough
CT: control target
= control target key end

     0   :  { %s1090_s0 = inlined_call_operand.vmem [shape: f32[2,18,72], index: 0, kind: input, shape index: {}]   ;;  %s1091_s1 = inlined_call_operand.hbm [shape: f32[3,72,256], index: 1, kind: input, shape index: {}]   ;;  %s1092_s2 = inlined_call_operand.vmem [shape: f32[1,256], index: 2, kind: input, shape index: {}]   ;;  %s1093_s3 = inlined_call_operand.<no memory space> [shape: f32[1], index: 3, kind: input, shape index: {}]   ;;  %s1094_s4 = inlined_call_operand.hbm [shape: f32[2,16,256], index: 4, kind: output, shape index: {}]  }
   0x1   :  { %9 = sst [smem:[#allocation2]] %s1093_s3 }
   0x2   :  { %10 = vsyncpa [#allocation4], 0 }
   0x3   :  { %11 = vsyncpa [#allocation5], 0 }
   0x4   :  { %13 = vsyncpa [#allocation5 + $0x1], 0  ;;  %s923_s17 = smov 0   ;;  %s925_s18 = smov 0  }
   0x5   :  { %s927_s19 = smov 0   ;;  %s929_s20 = smov 0  }
   0x6 LB: > { %s944_s3 = sadd.s32 4294967295, %s886_s20   ;;  %s650_s21 = sadd.s32 4294967294, %s886_s20   ;;  %s886_s20 = sphi %s929_s20, %s1110_s20   ;;  %s882_s19 = sphi %s927_s19, %s1109_s19   ;;  %s878_s18 = sphi %s925_s18, %s1108_s18   ;;  %s874_s17 = sphi %s923_s17, %s1107_s17  }
   0x7   : > { %s948_s22 = sadd.s32 1, %s886_s20   ;;  %s115_s23 = sadd.s32 1, %s882_s19 }
   0x8   : > { %s112_s24 = ssub.s32 %s886_s20, %s948_s22  ;;  %p125_p0 = scmp.ne.s32.totalorder %s882_s19, %s878_s18 }
   0x9   : > { %p113_p1 = scmp.eq.s32.totalorder %s112_s24, 0  ;;  %p126_p2 = scmp.eq.s32.totalorder %s944_s3, 1 }
   0xa   : > { %p131_p3 = scmp.ne.s32.totalorder %s878_s18, %s874_s17  ;;  %p132_p4 = scmp.eq.s32.totalorder %s650_s21, 1 }
   0xb   : > { %s959_s25 = scalar_select %p113_p1, %s882_s19, %s115_s23  }
   0xc   : > { %p961_p5 = por %p126_p2, %p125_p0  ;;  %p965_p6 = por %p132_p4, %p131_p3 }
   0xd   : > { %p651_p7 = scmp.ge.s32.totalorder %s886_s20, 1  ;;  %p139_p8 = scmp.lt.s32.totalorder %s886_s20, 3 }
   0xe   : > { %s1098_s26 = scalar_select %p961_p5, 1, 0 }
   0xf   : > { %s1099_s27 = scalar_select %p965_p6, 1, 0 }
  0x10   : > { %p1095_p9 = scmp.eq.s32.totalorder %s944_s3, 0  ;;  %p972_p10 = pnand %p651_p7, %p139_p8 }
  0x11   : > { %s888_s29 = smov [#allocation3]   ;;  %s792_s8 = scalar_lea.hbm %s1091_s1, 6912 }
  0x12   : > { %s1100_s28 = scalar_select %p972_p10, 1, 0 }
  0x13   : > { %s151_s30 = sshll.u32 %s888_s29, 4  ;;  %p743_p11 = pneg %p972_p10  ;;  %s152_s30 = int_to_ptr.vmem [resolvable:$true] %s151_s30 }
  0x14   : > { %p793_p13 = scmp.ne.s32.totalorder %s1091_s1, %s792_s8  ;;  %p799_p3 = scmp.lt.u32.totalorder %s792_s8, %s1091_s1 }
  0x15   : > { %p980_p12 = pnand %p1095_p9, %p743_p11 }
  0x17   : > { %p794_p0 = pneg %p980_p12 }
  0x19   : > { %p795_p1 = pnand %p794_p0, %p793_p13 }
  0x1b   : > { %p796_p2 = pneg %p795_p1 }
  0x1d   : > { %p801_p4 = pnand %p799_p3, %p796_p2 }
  0x1f   : > { %804 = shalt.err (!%p801_p4)
}
  0x20   : > { %s805_s13 = scalar_lea.vmem %s152_s30, 6912  ;;  %p813_p9 = scmp.lt.s32.totalorder %s152_s30, %s152_s30 }
  0x21   : > { %p806_p7 = scmp.ne.s32.totalorder %s152_s30, %s805_s13  ;;  %p814_p6 = scmp.lt.s32.totalorder %s805_s13, %s805_s13 }
  0x23   : > { %p808_p8 = pnand %p806_p7, %p794_p0  ;;  %p815_p5 = por %p814_p6, %p813_p9 }
  0x25   : > { %p809_p11 = pneg %p808_p8 }
  0x27   : > { %p816_p10 = pnand %p815_p5, %p809_p11 }
  0x29   : > { %819 = shalt.err (!%p816_p10)
}
  0x2a   : > { %s889_s14 = smov 256   ;;  %s890_s15 = smov 16  }
  0x2b   : > { %746 = dma.hbm_to_vmem [thread:$0]  (!%p980_p12), %s1091_s1, 6912, %s152_s30, [#allocation4], %s889_s14, %s889_s14, %s890_s15  }
  0x2c   : > { %p1102_p13 = scmp.ne.s32.totalorder %s1100_s28, 0 }
  0x2d   : > { %p1103_p1 = scmp.eq.s32.totalorder (!%p1102_p13), %s944_s3, 0 }
  0x2e   : > { %181 = sbr.rel (%p1102_p13) target bundleno = 331 (0x14b), region = 36 }
  0x35   : > { %865 = dma.done.wait (%p1103_p1), [#allocation4], 6912   ;;  %p1104_p0 = pmov %p1103_p1 }
  0x36   : > { %v891_v0 = vmov 0.0   ;;  %v236_v1 = vld [vmem:[#allocation3 + $0x98] sm:$0xff]  ;;  %v238_v2 = vld [vmem:[#allocation3 + $0xa8] sm:$0xff]  ;;  %v235_v6 = vld [vmem:[#allocation3 + $0x90] sm:$0xff]  ;;  %p207_p5 = scmp.lt.s32.totalorder %s944_s3, 1  ;;  %vm253_vm0 = vcmask 588800  }
  0x37   : > { %867 = vsyncadd (%p1104_p0), [#allocation4], 4294960384  ;;  %324 = vmatprep.mubr.f32.mxu1 %v891_v0  ;;  %407 = vmatprep.mubr.f32.mxu0 %v891_v0  ;;  %v215_v3 = vld [vmem:[#allocation3 + $0x8] sm:$0xff]  ;;  %v670_v4 = vpack.c.bf16 %v238_v2, %v236_v1  ;;  %v217_v5 = vld [vmem:[#allocation3 + $0x18] sm:$0xff]  ;;  %s544_s5 = sld [smem:[#allocation2]]  ;;  %s204_s6 = sand.u32 1, %s878_s18  }
  0x38   : > { %v237_v7 = vld [vmem:[#allocation3 + $0xa0] sm:$0xff]  ;;  %v686_v8 = vpack.c.bf16 %v217_v5, %v215_v3  ;;  %v216_v11 = vld [vmem:[#allocation3 + $0x10] sm:$0xff]  ;;  %v240_v12 = vld [vmem:[#allocation3 + $0xb8] sm:$0xff]  ;;  %s208_s23 = scalar_select %p207_p5, %s944_s3, 1 }
  0x39   : > { %v672_v9 = vpack.c.bf16 %v237_v7, %v235_v6  ;;  %v214_v10 = vld [vmem:[#allocation3] sm:$0xff]  ;;  %671 = vmatprep.subr.bf16.mxu1 %v670_v4  ;;  %v242_v14 = vld [vmem:[#allocation3 + $0xc8] sm:$0xff]  ;;  %v221_v16 = vld [vmem:[#allocation3 + $0x38] sm:$0xff]  ;;  %s656_s9 = sshll.u32 %s204_s6, 5  ;;  %s669_s12 = sshll.u32 %s944_s3, 9 }
  0x3a   : > { %v688_v13 = vpack.c.bf16 %v216_v11, %v214_v10  ;;  %v219_v15 = vld [vmem:[#allocation3 + $0x28] sm:$0xff]  ;;  %687 = vmatprep.subr.bf16.mxu0 %v686_v8  ;;  %v674_v17 = vpack.c.bf16 %v242_v14, %v240_v12  ;;  %v239_v19 = vld [vmem:[#allocation3 + $0xb0] sm:$0xff]  ;;  %v241_v20 = vld [vmem:[#allocation3 + $0xc0] sm:$0xff]  ;;  %s736_s24 = smul.u32 24, %s208_s23  ;;  %s206_s10 = scalar_lea.vmem [#allocation6], %s656_s9 }
  0x3b   : > { %673 = vmatpush1.bf16.msra.mxu1 %v672_v9  ;;  %v690_v18 = vpack.c.bf16 %v221_v16, %v219_v15  ;;  %v218_v21 = vld [vmem:[#allocation3 + $0x20] sm:$0xff]  ;;  %v676_v22 = vpack.c.bf16 %v241_v20, %v239_v19  ;;  %v220_v23 = vld [vmem:[#allocation3 + $0x30] sm:$0xff]  ;;  %v244_v24 = vld [vmem:[#allocation3 + $0xd8] sm:$0xff]  ;;  %s576_s11 = sshll.u32 %s206_s10, 4  ;;  %s1045_s3 = scalar_lea.hbm %s1094_s4, %s669_s12  ;;  %s1040_s11 = int_to_ptr.vmem [resolvable:$true] %s576_s11 }
  0x3c   : > { %689 = vmatpush1.bf16.msra.mxu0 %v688_v13  ;;  %v246_v25 = vld [vmem:[#allocation3 + $0xe8] sm:$0xff]  ;;  %675 = vmatprep.subr.bf16.mxu1 %v674_v17  ;;  %v692_v26 = vpack.c.bf16 %v220_v23, %v218_v21  ;;  %v225_v29 = vld [vmem:[#allocation3 + $0x58] sm:$0xff]  ;;  %v243_v30 = vld [vmem:[#allocation3 + $0xd0] sm:$0xff]  ;;  %s1015_s30 = scalar_lea.vmem %s1090_s0, %s736_s24  ;;  %s1049_s15 = scalar_lea.sflag [#allocation5], %s204_s6 }
  0x3d   : > { %691 = vmatprep.subr.bf16.mxu0 %v690_v18  ;;  %v678_v27 = vpack.c.bf16 %v246_v25, %v244_v24  ;;  %v223_v28 = vld [vmem:[#allocation3 + $0x48] sm:$0xff]  ;;  %v245_v32 = vld [vmem:[#allocation3 + $0xe0] sm:$0xff]  ;;  %v224_v34 = vld [vmem:[#allocation3 + $0x50] sm:$0xff]  ;;  %s820_s16 = scalar_lea.vmem %s1040_s11, 512  ;;  %p1105_p9 = scmp.ne.s32.totalorder %s1098_s26, 0 }
  0x3e   : > { %v694_v31 = vpack.c.bf16 %v225_v29, %v223_v28  ;;  %v222_v33 = vld [vmem:[#allocation3 + $0x40] sm:$0xff]  ;;  %v680_v35 = vpack.c.bf16 %v245_v32, %v243_v30  ;;  %v248_v36 = vld [vmem:[#allocation3 + $0xf8] sm:$0xff]  ;;  %v250_v37 = vld [vmem:[#allocation3 + $0x108] sm:$0xff]  ;;  %p821_p6 = scmp.ne.s32.totalorder %s1040_s11, %s820_s16  ;;  %s892_s21 = smov [#allocation6]  }
  0x3f   : > { %677 = vmatpush1.bf16.msra.mxu1 %v676_v22  ;;  %v227_v38 = vld [vmem:[#allocation3 + $0x68] sm:$0xff]  ;;  %v696_v39 = vpack.c.bf16 %v224_v34, %v222_v33  ;;  %v682_v40 = vpack.c.bf16 %v250_v37, %v248_v36  ;;  %v229_v41 = vld [vmem:[#allocation3 + $0x78] sm:$0xff]  ;;  %v247_v42 = vld [vmem:[#allocation3 + $0xf0] sm:$0xff]  ;;  %s824_s23 = sshll.u32 %s892_s21, 4  ;;  %s825_s23 = int_to_ptr.vmem [resolvable:$false] %s824_s23 }
  0x40   : > { %693 = vmatpush1.bf16.msra.mxu0 %v692_v26  ;;  %679 = vmatprep.subr.bf16.mxu1 %v678_v27  ;;  %v249_v43 = vld [vmem:[#allocation3 + $0x100] sm:$0xff]  ;;  %v698_v44 = vpack.c.bf16 %v229_v41, %v227_v38  ;;  %v228_v46 = vld [vmem:[#allocation3 + $0x70] sm:$0xff]  ;;  %v252_v49 = vld [vmem:[#allocation3 + $0x118] sm:$0xff]  ;;  %v530_v26 = vlaneseq  ;;  %v549_v41 = vstv %s544_s5  ;;  %p822_p10 = pnand %p821_p6, %p1105_p9  ;;  %s826_s24 = scalar_lea.vmem %s825_s23, 1024 }
  0x41   : > { %695 = vmatprep.subr.bf16.mxu0 %v694_v31  ;;  %v226_v45 = vld [vmem:[#allocation3 + $0x60] sm:$0xff]  ;;  %v684_v47 = vpack.c.bf16 %v249_v43, %v247_v42  ;;  %v231_v50 = vld [vmem:[#allocation3 + $0x88] sm:$0xff]  ;;  %v426_v52 = vld [vmem:[#allocation3 + $0x138] sm:$0xff]  ;;  %p827_p2 = scmp.lt.s32.totalorder %s1040_s11, %s825_s23  ;;  %p828_p3 = scmp.lt.s32.totalorder %s826_s24, %s820_s16 }
  0x42   : > { %v700_v48 = vpack.c.bf16 %v228_v46, %v226_v45  ;;  %v424_v51 = vld [vmem:[#allocation3 + $0x128] sm:$0xff]  ;;  %v423_v53 = vld [vmem:[#allocation3 + $0x120] sm:$0xff]  ;;  %v425_v54 = vld [vmem:[#allocation3 + $0x130] sm:$0xff]  ;;  %v531_v30 = vshrl.u32 %v530_v26, 7  ;;  %p823_p12 = pneg %p822_p10 }
  0x43   : > { %681 = vmatpush1.bf16.msra.mxu1 %v680_v35  ;;  %v251_v55 = vld [vmem:[#allocation3 + $0x110] sm:$0xff]  ;;  %v428_v56 = vld [vmem:[#allocation3 + $0x148] sm:$0xff]  ;;  %v430_v57 = vld [vmem:[#allocation3 + $0x158] sm:$0xff]  ;;  %v702_v60 = vpack.c.bf16 %v426_v52, %v424_v51  ;;  %v704_v61 = vpack.c.bf16 %v425_v54, %v423_v53  ;;  %p829_p4 = por %p828_p3, %p827_p2 }
  0x44   : > { %697 = vmatpush1.bf16.msra.mxu0 %v696_v39  ;;  %683 = vmatprep.subr.bf16.mxu1 %v682_v40  ;;  %v230_v58 = vld [vmem:[#allocation3 + $0x80] sm:$0xff]  ;;  %v706_v63 = vpack.c.bf16 %v430_v57, %v428_v56  ;;  %v429_v2 = vld [vmem:[#allocation3 + $0x150] sm:$0xff]  ;;  %v432_v3 = vld [vmem:[#allocation3 + $0x168] sm:$0xff]  ;;  %v532_v31 = vsub.s32 0, %v531_v30  ;;  %v536_v33 = vsub.s32 1, %v531_v30 }
  0x45   : > { %699 = vmatprep.subr.bf16.mxu0 %v698_v44  ;;  %v232_v59 = vld [vmem:[%s1015_s30 + $0x1] sm:$0xff]  ;;  %v434_v4 = vld [vmem:[#allocation3 + $0x178] sm:$0xff]  ;;  %v233_v6 = vld [vmem:[%s1015_s30 + $0x9] sm:$0xff]  ;;  %p830_p7 = pnand %p829_p4, %p823_p12 }
  0x46   : > { %v212_v62 = vld [vmem:[%s1015_s30] sm:$0xff]  ;;  %v710_v7 = vpack.c.bf16 %v434_v4, %v432_v3  ;;  %v433_v9 = vld [vmem:[#allocation3 + $0x170] sm:$0xff]  ;;  %v213_v10 = vld [vmem:[%s1015_s30 + $0x8] sm:$0xff] }
  0x47   : > { %685 = vmatpush1.bf16.msra.mxu1 %v684_v47  ;;  %v427_v1 = vld [vmem:[#allocation3 + $0x140] sm:$0xff]  ;;  %v436_v11 = vld [vmem:[#allocation3 + $0x188] sm:$0xff]  ;;  %v438_v12 = vld [vmem:[#allocation3 + $0x198] sm:$0xff] }
  0x48   : > { %701 = vmatpush1.bf16.msra.mxu0 %v700_v48  ;;  %276 = vmatprep.subr.mxu1 %v252_v49  ;;  %v708_v5 = vpack.c.bf16 %v429_v2, %v427_v1  ;;  %v431_v8 = vld [vmem:[#allocation3 + $0x160] sm:$0xff]  ;;  %v714_v14 = vpack.c.bf16 %v438_v12, %v436_v11  ;;  %v437_v16 = vld [vmem:[#allocation3 + $0x190] sm:$0xff]  ;;  %v440_v18 = vld [vmem:[#allocation3 + $0x1a8] sm:$0xff] }
  0x49   : > { %359 = vmatprep.subr.mxu0 %v231_v50  ;;  %v712_v13 = vpack.c.bf16 %v433_v9, %v431_v8  ;;  %v435_v15 = vld [vmem:[#allocation3 + $0x180] sm:$0xff]  ;;  %v421_v20 = vld [vmem:[%s1015_s30 + $0xa] sm:$0xff] }
  0x4a   : > { %v716_v17 = vpack.c.bf16 %v437_v16, %v435_v15  ;;  %v439_v19 = vld [vmem:[#allocation3 + $0x1a0] sm:$0xff] }
  0x4b   : > { %277 = vmatpush1.msra.mxu1 %v251_v55  ;;  %v420_v21 = vld [vmem:[%s1015_s30 + $0x2] sm:$0xff]  ;;  %v528_v32 = vld [vmem:[%s1092_s2] sm:$0x3] }
  0x4c   : > { %360 = vmatpush1.msra.mxu0 %v230_v58  ;;  %658 = vmatmul.mubr.msk.f32.vlgmr.msra.gmra.mrb[0].mxu1 %vm253_vm0, %v232_v59  ;;  %v533_v34 = vrot.slane %v528_v32, %v532_v31  ;;  %v537_v36 = vrot.slane %v528_v32, %v536_v33 }
  0x4d   : > { %703 = vmatprep.subr.bf16.mxu0 %v702_v60  ;;  %718 = vmatprep.subr.bf16.mxu1 %v702_v60 }
  0x4e   : > { %660 = vmatmul.mubr.msk.f32.vlgmr.msra.gmra.mrb[0].mxu0 %vm253_vm0, %v212_v62  ;;  %723 = vmatpush1.bf16.msra.mxu1 %v704_v61 }
  0x4f   : > { %705 = vmatpush1.bf16.msra.mxu0 %v704_v61  ;;  %719 = vmatprep.subr.bf16.mxu1 %v706_v63 }
  0x50   : > { %707 = vmatprep.subr.bf16.mxu0 %v706_v63  ;;  %330 = vmatprep.mubr.f32.mxu1 %v891_v0 }
  0x51   : > { %413 = vmatprep.mubr.f32.mxu0 %v891_v0  ;;  %659 = vmatmul.mubr.msk.f32.gmra.mrb[2].mxu1 %vm253_vm0, %v233_v6 }
  0x52   : > { %724 = vmatpush1.bf16.msra.mxu1 %v708_v5  ;;  %661 = vmatmul.mubr.msk.f32.gmra.mrb[2].mxu0 %vm253_vm0, %v213_v10 }
  0x53   : > { %709 = vmatpush1.bf16.msra.mxu0 %v708_v5  ;;  %720 = vmatprep.subr.bf16.mxu1 %v710_v7 }
  0x54   : > { %711 = vmatprep.subr.bf16.mxu0 %v710_v7  ;;  %511 = vmatprep.mubr.f32.mxu0 %v891_v0 }
  0x55   : > { %517 = vmatprep.mubr.f32.mxu1 %v891_v0 }
  0x56   : > { %725 = vmatpush1.bf16.msra.mxu1 %v712_v13 }
  0x57   : > { %713 = vmatpush1.bf16.msra.mxu0 %v712_v13  ;;  %721 = vmatprep.subr.bf16.mxu1 %v714_v14 }
  0x58   : > { %715 = vmatprep.subr.bf16.mxu0 %v714_v14 }
  0x5a   : > { %726 = vmatpush1.bf16.msra.mxu1 %v716_v17 }
  0x5b   : > { %717 = vmatpush1.bf16.msra.mxu0 %v716_v17  ;;  %722 = vmatprep.subr.mxu1 %v440_v18 }
  0x5c   : > { %463 = vmatprep.subr.mxu0 %v440_v18 }
  0x5e   : > { %727 = vmatpush1.msra.mxu1 %v439_v19 }
  0x5f   : > { %464 = vmatpush1.msra.mxu0 %v439_v19  ;;  %663 = vmatmul.mubr.msk.f32.vlgmr.msra.gmra.mrb[4].mxu1 %vm253_vm0, %v421_v20 }
  0x60   : > { %662 = vmatmul.mubr.msk.f32.vlgmr.msra.gmra.mrb[0].mxu0 %vm253_vm0, %v420_v21 }
 0x11f   : > { %v326_v0 = vpop.f32.mrb[0].mxu1 }
 0x120   : > { %v328_v22 = vpop.f32.mrb[1].mxu1 }
 0x124   : > { %v332_v23 = vpop.f32.mrb[2].mxu1 }
 0x125   : > { %v415_v24 = vpop.f32.mrb[2].mxu0  ;;  %v334_v25 = vpop.f32.mrb[3].mxu1 }
 0x126   : > { %v416_v27 = vadd.f32 %v415_v24, %v332_v23  ;;  %v417_v28 = vpop.f32.mrb[3].mxu0 }
 0x127   : > { %v418_v29 = vadd.f32 %v417_v28, %v334_v25 }
 0x132   : > { %v519_v35 = vpop.f32.mrb[4].mxu1 }
 0x133   : > { %v513_v37 = vpop.f32.mrb[0].mxu0  ;;  %v526_v38 = vadd.f32 %v519_v35, %v416_v27  ;;  %v521_v39 = vpop.f32.mrb[5].mxu1 }
 0x134   : > { %v728_v40 = vadd.f32 %v513_v37, %v326_v0  ;;  %v515_v42 = vpop.f32.mrb[1].mxu0  ;;  %v527_v43 = vadd.f32 %v521_v39, %v418_v29 }
 0x135   : > { %v542_v44 = vadd.f32 %v533_v34, %v526_v38  ;;  %v729_v45 = vadd.f32 %v515_v42, %v328_v22 }
 0x136   : > { %v540_v46 = vadd.f32 %v728_v40, %v533_v34  ;;  %v543_v47 = vadd.f32 %v537_v36, %v527_v43 }
 0x137   : > { %vm547_vm1 = vcmp.ge.f32.partialorder %v542_v44, 0.0  ;;  %v552_v48 = vmul.f32 %v549_v41, %v542_v44  ;;  %v541_v49 = vadd.f32 %v729_v45, %v537_v36 }
 0x138   : > { %vm545_vm2 = vcmp.ge.f32.partialorder %v540_v46, 0.0  ;;  %v550_v50 = vmul.f32 %v549_v41, %v540_v46  ;;  %vm548_vm3 = vcmp.ge.f32.partialorder %v543_v47, 0.0  ;;  %v553_v51 = vmul.f32 %v549_v41, %v543_v47 }
 0x139   : > { %v556_v52 = vsel %vm547_vm1, %v542_v44, %v552_v48  ;;  %vm546_vm4 = vcmp.ge.f32.partialorder %v541_v49, 0.0  ;;  %v551_v53 = vmul.f32 %v549_v41, %v541_v49 }
 0x13a   : > { %v554_v54 = vsel %vm545_vm2, %v540_v46, %v550_v50  ;;  %560 = vst [vmem:[%s206_s10 + $0x10] sm:$0xff] %v556_v52  ;;  %v557_v55 = vsel %vm548_vm3, %v543_v47, %v553_v51 }
 0x13b   : > { %558 = vst [vmem:[%s206_s10] sm:$0xff] %v554_v54  ;;  %v555_v56 = vsel %vm546_vm4, %v541_v49, %v551_v53  ;;  %561 = vst [vmem:[%s206_s10 + $0x18] sm:$0xff] %v557_v55 }
 0x13c   : > { %559 = vst [vmem:[%s206_s10 + $0x8] sm:$0xff] %v555_v56 }
 0x13d   : > { %833 = shalt.err (!%p830_p7)
}
 0x13e   : > { %s834_s28 = scalar_lea.hbm %s1045_s3, 512  ;;  %s838_s5 = scalar_lea.hbm %s1094_s4, 1024 }
 0x13f   : > { %p835_p8 = scmp.ne.s32.totalorder %s1045_s3, %s834_s28  ;;  %p839_p1 = scmp.lt.u32.totalorder %s1045_s3, %s1094_s4 }
 0x140   : > { %p840_p0 = scmp.lt.u32.totalorder %s838_s5, %s834_s28  ;;  %p842_p6 = scmp.lt.u32.totalorder %s834_s28, %s1045_s3 }
 0x141   : > { %p836_p11 = pnand %p835_p8, %p1105_p9 }
 0x142   : > { %p841_p5 = por %p840_p0, %p839_p1 }
 0x143   : > { %p837_p13 = pneg %p836_p11 }
 0x144   : > { %p843_p10 = por %p842_p6, %p841_p5 }
 0x146   : > { %p844_p12 = pnand %p843_p10, %p837_p13 }
 0x148   : > { %847 = shalt.err (!%p844_p12)
}
 0x149   : > { %s893_s8 = smov 256   ;;  %s894_s9 = smov 16  }
 0x14a   : > { %741 = dma.vmem_to_hbm [thread:$0]  (%p1105_p9), %s1040_s11, 512, %s1045_s3, %s1049_s15, %s893_s8, %s893_s8, %s894_s9  }
 0x14b PF: > { %p753_p2 = scmp.ge.s32.totalorder %s886_s20, 2  ;;  %s591_s10 = sand.u32 1, %s874_s17  }
 0x14c   : > { %p1106_p3 = scmp.ne.s32.totalorder %s1099_s27, 0  ;;  %s592_s12 = scalar_lea.sflag [#allocation5], %s591_s10 }
 0x14e   : > { %p748_p4 = pnand %p753_p2, %p1106_p3 }
 0x150   : > { %869 = dma.done.wait (!%p748_p4), %s592_s12, 512  }
 0x151   : > { %871 = vsyncadd (!%p748_p4), %s592_s12, 4294966784  ;;  %p16_p7 = scmp.ge.s32.totalorder %s948_s22, 4   ;;  %s1107_s17 = smov %s878_s18 }
 0x152   : > { %s1108_s18 = smov %s882_s19  ;;  %s1109_s19 = smov %s959_s25 }
 0x153   : > { %s1110_s20 = smov %s948_s22  ;;  %18 = sbr.rel (!%p16_p7) target bundleno = 6 (0x6), region = 78 }
 0x15a   :  { %597 = vsyncpa [#allocation4], 1 }
 0x15b   :  { %599 = vsyncpa [#allocation4 + $0x1], 1 }
 0x15c   :  { %600 = vsyncpa [#allocation5], 1 }
 0x15d   :  { %602 = vsyncpa [#allocation5 + $0x1], 1 }

</bundles_post_ra>
